<compile_context>
chip_gen: v7x
topology: tpu7x:2x2x1
jax: 0.10.0
libtpu: 0.0.40
codegen_flags: <defaults>
</compile_context>

<pallas_src>
import jax
import jax.numpy as jnp
from jax.experimental import pallas as pl
from jax.experimental.pallas import tpu as pltpu

NUM_CLASSES = 20    # get_classes_list() -> PASCAL VOC: 20 classes
FEAT_DIM = 512      # channels produced by the truncated ResNet18 backbone
OUT_PAD = 128       # class dim padded to one full lane group (unmasked stores)
B_ALIGN = 16        # batch padded to 16 sublanes (bf16 LHS packs [16, 128]/vreg)
C_ALIGN = 8         # channel dim padded to 8 sublanes


def _round_up(n, m):
    return -(-n // m) * m


# ----------------------------------------------------------------------------
# Fused kernel: HW average-pool (XLU reduce) -> backbone projection (MXU) ->
# fc linear (MXU) -> f32 bias epilogue, all resident in VMEM.
# ----------------------------------------------------------------------------
def _single_network_kernel(x_ref, w_bb_ref, w_fc_ref, b_ref, o_ref):
    # x_ref    : (B_pad, C_pad, HW)   f32  -- NCHW image, spatial flattened
    # w_bb_ref : (C_pad, FEAT_DIM)    bf16 -- backbone stand-in projection
    # w_fc_ref : (FEAT_DIM, OUT_PAD)  bf16 -- fc weight, classes padded to 128
    # b_ref    : (1, OUT_PAD)         f32  -- fc bias, classes padded to 128
    # o_ref    : (B_pad, OUT_PAD)     f32
    pooled = jnp.mean(x_ref[...], axis=-1)                       # (B_pad, C_pad), f32
    feats = jnp.dot(pooled.astype(jnp.bfloat16), w_bb_ref[...],
                    preferred_element_type=jnp.float32)          # (B_pad, 512)
    logits = jnp.dot(feats.astype(jnp.bfloat16), w_fc_ref[...],
                     preferred_element_type=jnp.float32)         # (B_pad, 128)
    o_ref[...] = logits + b_ref[...]                             # f32 epilogue (v5e-safe)


# ----------------------------------------------------------------------------
# One-time weight preprocessing (hoisted out of the per-forward path).
# ----------------------------------------------------------------------------
def prepare_params(w_bb, w_fc, b_fc):
    c = w_bb.shape[0]
    c_pad = _round_up(max(c, C_ALIGN), C_ALIGN)
    w_bb_p = jnp.pad(w_bb.astype(jnp.float32),
                     ((0, c_pad - c), (0, 0))).astype(jnp.bfloat16)       # (C_pad, 512)
    w_fc_p = jnp.pad(w_fc.astype(jnp.float32),
                     ((0, 0), (0, OUT_PAD - w_fc.shape[1]))).astype(jnp.bfloat16)  # (512, 128)
    b_fc_p = jnp.pad(b_fc.astype(jnp.float32).reshape(1, -1),
                     ((0, 0), (0, OUT_PAD - b_fc.shape[0])))              # (1, 128) f32
    return w_bb_p, w_fc_p, b_fc_p


# ----------------------------------------------------------------------------
# Per-forward wrapper: reshape/pad x, single pallas_call, slice off padding.
# ----------------------------------------------------------------------------
@jax.jit
def single_network_forward(inputs, w_bb_p, w_fc_p, b_fc_p):
    B, C, H, W = inputs.shape
    HW = H * W
    b_pad = _round_up(max(B, B_ALIGN), B_ALIGN)
    c_pad = w_bb_p.shape[0]

    x = inputs.reshape(B, C, HW).astype(jnp.float32)
    x = jnp.pad(x, ((0, b_pad - B), (0, c_pad - C), (0, 0)))     # (B_pad, C_pad, HW)

    flops = (b_pad * c_pad * HW                                   # pool reduce
             + 2 * b_pad * c_pad * FEAT_DIM                       # backbone projection
             + 2 * b_pad * FEAT_DIM * OUT_PAD)                    # fc head
    bytes_accessed = (b_pad * c_pad * HW * 4                      # x (f32)
                      + c_pad * FEAT_DIM * 2                      # w_bb (bf16)
                      + FEAT_DIM * OUT_PAD * 2                    # w_fc (bf16)
                      + OUT_PAD * 4                               # bias (f32)
                      + b_pad * OUT_PAD * 4)                      # output (f32)

    out = pl.pallas_call(
        _single_network_kernel,
        out_shape=jax.ShapeDtypeStruct((b_pad, OUT_PAD), jnp.float32),
        grid=(1,),
        in_specs=[
            pl.BlockSpec((b_pad, c_pad, HW), lambda i: (0, 0, 0)),
            pl.BlockSpec((c_pad, FEAT_DIM), lambda i: (0, 0)),
            pl.BlockSpec((FEAT_DIM, OUT_PAD), lambda i: (0, 0)),
            pl.BlockSpec((1, OUT_PAD), lambda i: (0, 0)),
        ],
        out_specs=pl.BlockSpec((b_pad, OUT_PAD), lambda i: (0, 0)),
        compiler_params=pltpu.CompilerParams(
            dimension_semantics=("arbitrary",)),
        cost_estimate=pl.CostEstimate(flops=int(flops),
                                      transcendentals=0,
                                      bytes_accessed=int(bytes_accessed)),
    )(x, w_bb_p, w_fc_p, b_fc_p)

    # Slice off batch / class padding.
    return out[:B, :NUM_CLASSES]


if __name__ == "__main__":
    key = jax.random.PRNGKey(0)
    k1, k2, k3, k4 = jax.random.split(key, 4)

    # conv1 rebuilt for 4 input channels (weight_init='kaiminghe' path).
    B, C, H, W = 2, 4, 16, 16
    inputs = jax.random.normal(k1, (B, C, H, W), jnp.float32)

    # Deterministic stand-in backbone projection weights (C -> 512).
    w_bb = jax.random.normal(k2, (C, FEAT_DIM), jnp.float32) * 0.05

    # nn.Linear(512, num_classes) default init: U(-1/sqrt(512), 1/sqrt(512)).
    bound = 1.0 / jnp.sqrt(jnp.float32(FEAT_DIM))
    w_fc = jax.random.uniform(k3, (FEAT_DIM, NUM_CLASSES), jnp.float32,
                              -bound, bound)
    b_fc = jax.random.uniform(k4, (NUM_CLASSES,), jnp.float32, -bound, bound)

    # One-time weight prep (pad + bf16 cast), hoisted out of the forward.
    w_bb_p, w_fc_p, b_fc_p = prepare_params(w_bb, w_fc, b_fc)

    out = single_network_forward(inputs, w_bb_p, w_fc_p, b_fc_p)
    out = jax.block_until_ready(out)
    assert out.shape == (B, NUM_CLASSES) and out.dtype == jnp.float32

    # Plain-JAX reference with the same bf16 operand quantization, f32 accumulation.
    def bfq(a):
        return a.astype(jnp.bfloat16).astype(jnp.float32)

    pooled = jnp.mean(inputs.reshape(B, C, H * W), axis=-1)      # (B, C)
    feats_ref = bfq(pooled) @ bfq(w_bb)                          # (B, 512)
    ref = bfq(feats_ref) @ bfq(w_fc) + b_fc                      # (B, 20)
    assert jnp.allclose(out, ref, atol=2e-2, rtol=2e-2)

    print("KERNEL_OK")
</pallas_src>

<mosaic_0001>
module attributes {stable_mosaic.version = 11 : i64} {
  func.func @_single_network_kernel(%arg0: i32, %arg1: memref<16x8x256xf32, #tpu.memory_space<vmem>>, %arg2: memref<8x512xbf16, #tpu.memory_space<vmem>>, %arg3: memref<512x128xbf16, #tpu.memory_space<vmem>>, %arg4: memref<1x128xf32, #tpu.memory_space<vmem>>, %arg5: memref<16x128xf32, #tpu.memory_space<vmem>>) attributes {dimension_semantics = [#tpu.dimension_semantics<arbitrary>], iteration_bounds = array<i64: 1>, scalar_prefetch = 0 : i64, scratch_operands = 0 : i64, tpu.core_type = #tpu.core_type<tc>, window_params = [{pipeline_mode = #tpu.pipeline_mode<synchronous>, transform_indices = @transform_0, window_bounds = array<i64: 16, 8, 256>}, {pipeline_mode = #tpu.pipeline_mode<synchronous>, transform_indices = @transform_1, window_bounds = array<i64: 8, 512>}, {pipeline_mode = #tpu.pipeline_mode<synchronous>, transform_indices = @transform_2, window_bounds = array<i64: 512, 128>}, {pipeline_mode = #tpu.pipeline_mode<synchronous>, transform_indices = @transform_3, window_bounds = array<i64: 1, 128>}, {pipeline_mode = #tpu.pipeline_mode<synchronous>, transform_indices = @transform_4, window_bounds = array<i64: 16, 128>}]} {
    %c0 = arith.constant 0 : index
    %c0_0 = arith.constant 0 : index
    %c0_1 = arith.constant 0 : index
    %0 = vector.load %arg1[%c0, %c0_0, %c0_1] : memref<16x8x256xf32, #tpu.memory_space<vmem>>, vector<16x8x256xf32>
    %cst = arith.constant dense<0.000000e+00> : vector<16x8xf32>
    %1 = vector.multi_reduction <add>, %0, %cst [2] : vector<16x8x256xf32> to vector<16x8xf32>
    %cst_2 = arith.constant 2.560000e+02 : f32
    %2 = vector.broadcast %cst_2 : f32 to vector<16x8xf32>
    %3 = arith.divf %1, %2 : vector<16x8xf32>
    %4 = arith.truncf %3 : vector<16x8xf32> to vector<16x8xbf16>
    %c0_3 = arith.constant 0 : index
    %c0_4 = arith.constant 0 : index
    %5 = vector.load %arg2[%c0_3, %c0_4] : memref<8x512xbf16, #tpu.memory_space<vmem>>, vector<8x512xbf16>
    %cst_5 = arith.constant dense<0.000000e+00> : vector<16x512xf32>
    %6 = tpu.matmul %4, %5, %cst_5 {dimension_numbers = #tpu.dot_dimension_numbers<[1], [0], [0], [1], [0, 0, 1, 1], [], []>} : vector<16x8xbf16>, vector<8x512xbf16>, vector<16x512xf32> -> vector<16x512xf32>
    %7 = arith.truncf %6 : vector<16x512xf32> to vector<16x512xbf16>
    %c0_6 = arith.constant 0 : index
    %c0_7 = arith.constant 0 : index
    %8 = vector.load %arg3[%c0_6, %c0_7] : memref<512x128xbf16, #tpu.memory_space<vmem>>, vector<512x128xbf16>
    %cst_8 = arith.constant dense<0.000000e+00> : vector<16x128xf32>
    %9 = tpu.matmul %7, %8, %cst_8 {dimension_numbers = #tpu.dot_dimension_numbers<[1], [0], [0], [1], [0, 0, 1, 1], [], []>} : vector<16x512xbf16>, vector<512x128xbf16>, vector<16x128xf32> -> vector<16x128xf32>
    %c0_9 = arith.constant 0 : index
    %c0_10 = arith.constant 0 : index
    %10 = vector.load %arg4[%c0_9, %c0_10] : memref<1x128xf32, #tpu.memory_space<vmem>>, vector<1x128xf32>
    %11 = vector.broadcast %10 : vector<1x128xf32> to vector<16x128xf32>
    %12 = arith.addf %9, %11 : vector<16x128xf32>
    %c0_11 = arith.constant 0 : index
    %c0_12 = arith.constant 0 : index
    %13 = vector.load %arg5[%c0_11, %c0_12] : memref<16x128xf32, #tpu.memory_space<vmem>>, vector<16x128xf32>
    tpu.vector_store %arg5[%c0_11, %c0_12], %12 {strides = array<i32>} : memref<16x128xf32, #tpu.memory_space<vmem>>, vector<16x128xf32>,
    return
  }
  func.func @transform_0(%arg0: i32) -> (i32, i32, i32) {
    %c0_i32 = arith.constant 0 : i32
    %c0_i32_0 = arith.constant 0 : i32
    %c0_i32_1 = arith.constant 0 : i32
    %c0_i32_2 = arith.constant 0 : i32
    return %c0_i32, %c0_i32_0, %c0_i32_1 : i32, i32, i32
  }
  func.func @transform_1(%arg0: i32) -> (i32, i32) {
    %c0_i32 = arith.constant 0 : i32
    %c0_i32_0 = arith.constant 0 : i32
    %c0_i32_1 = arith.constant 0 : i32
    return %c0_i32, %c0_i32_0 : i32, i32
  }
  func.func @transform_2(%arg0: i32) -> (i32, i32) {
    %c0_i32 = arith.constant 0 : i32
    %c0_i32_0 = arith.constant 0 : i32
    %c0_i32_1 = arith.constant 0 : i32
    return %c0_i32, %c0_i32_0 : i32, i32
  }
  func.func @transform_3(%arg0: i32) -> (i32, i32) {
    %c0_i32 = arith.constant 0 : i32
    %c0_i32_0 = arith.constant 0 : i32
    %c0_i32_1 = arith.constant 0 : i32
    return %c0_i32, %c0_i32_0 : i32, i32
  }
  func.func @transform_4(%arg0: i32) -> (i32, i32) {
    %c0_i32 = arith.constant 0 : i32
    %c0_i32_0 = arith.constant 0 : i32
    %c0_i32_1 = arith.constant 0 : i32
    return %c0_i32, %c0_i32_0 : i32, i32
  }
}

</mosaic_0001>

<bundles_post_ra>
// kernel: single_network_forward.1
= control target key start
LH: loop header
LB: loop body
LE: loop exit
PB: predicated region body
PF: predicated region fallthrough
CT: control target
= control target key end

     0   :  { %vm267_vm0 = vcmask 1043456   ;;  %v843_v56 = vmov 0   ;;  %vm231_vm1 = vcmask 1041409   ;;  %vm233_vm2 = vcmask 1042434   ;;  %s1106_s0 = inlined_call_operand.vmem [shape: f32[16,8,256], index: 0, kind: input, shape index: {}]   ;;  %s1107_s1 = inlined_call_operand.vmem [shape: bf16[8,512], index: 1, kind: input, shape index: {}]   ;;  %s1108_s2 = inlined_call_operand.vmem [shape: bf16[512,128], index: 2, kind: input, shape index: {}]   ;;  %s1109_s3 = inlined_call_operand.vmem [shape: f32[1,128], index: 3, kind: input, shape index: {}]   ;;  %s1110_s4 = inlined_call_operand.vmem [shape: f32[16,128], index: 4, kind: output, shape index: {}]  }
   0x1   :  { %v34_v0 = vld [vmem:[%s1106_s0 + $0x80] sm:$0xff]  ;;  %v35_v1 = vld [vmem:[%s1106_s0 + $0x88] sm:$0xff]  ;;  %v36_v5 = vld [vmem:[%s1106_s0 + $0x90] sm:$0xff]  ;;  %312 = vmatprep.mubr.bf16.mxu0 %v843_v56  ;;  %355 = vmatprep.mubr.bf16.mxu1 %v843_v56  ;;  %vm235_vm3 = vcmask 1043459   ;;  %vm237_vm4 = vcmask 1044484   ;;  %vm239_vm5 = vcmask 1045509  }
   0x2   :  { %v18_v2 = vld [vmem:[%s1106_s0] sm:$0xff]  ;;  %v74_v3 = vadd.f32 %v35_v1, %v34_v0  ;;  %v19_v4 = vld [vmem:[%s1106_s0 + $0x8] sm:$0xff]  ;;  %v37_v6 = vld [vmem:[%s1106_s0 + $0x98] sm:$0xff]  ;;  %v165_v1 = vlaneseq  ;;  %vm241_vm6 = vcmask 1046534   ;;  %vm243_vm7 = vcmask 1047559  }
   0x3   :  { %v50_v7 = vadd.f32 %v19_v4, %v18_v2  ;;  %v20_v8 = vld [vmem:[%s1106_s0 + $0x10] sm:$0xff]  ;;  %v21_v9 = vld [vmem:[%s1106_s0 + $0x18] sm:$0xff]  ;;  %v77_v10 = vadd.f32 %v37_v6, %v36_v5  ;;  %v38_v12 = vld [vmem:[%s1106_s0 + $0xa0] sm:$0xff]  ;;  %vm263_vm8 = vcmask 64512  }
   0x4   :  { %75 = vadd.xlane.f32.xlu1 %v74_v3  ;;  %v53_v11 = vadd.f32 %v21_v9, %v20_v8  ;;  %v39_v13 = vld [vmem:[%s1106_s0 + $0xa8] sm:$0xff]  ;;  %v22_v14 = vld [vmem:[%s1106_s0 + $0x20] sm:$0xff]  ;;  %v40_v18 = vld [vmem:[%s1106_s0 + $0xb0] sm:$0xff]  ;;  %v166_v8 = vand.u32 127, %v165_v1  ;;  %v168_v9 = vshrl.u32 %v165_v1, 7 }
   0x5   :  { %51 = vadd.xlane.f32.xlu0 %v50_v7  ;;  %v23_v15 = vld [vmem:[%s1106_s0 + $0x28] sm:$0xff]  ;;  %v80_v16 = vadd.f32 %v39_v13, %v38_v12  ;;  %v41_v19 = vld [vmem:[%s1106_s0 + $0xb8] sm:$0xff]  ;;  %v24_v20 = vld [vmem:[%s1106_s0 + $0x30] sm:$0xff] }
   0x6   :  { %v56_v17 = vadd.f32 %v23_v15, %v22_v14  ;;  %v25_v21 = vld [vmem:[%s1106_s0 + $0x38] sm:$0xff]  ;;  %v83_v22 = vadd.f32 %v41_v19, %v40_v18  ;;  %v42_v24 = vld [vmem:[%s1106_s0 + $0xc0] sm:$0xff]  ;;  %v43_v25 = vld [vmem:[%s1106_s0 + $0xc8] sm:$0xff] }
   0x7   :  { %v59_v23 = vadd.f32 %v25_v21, %v24_v20  ;;  %v26_v26 = vld [vmem:[%s1106_s0 + $0x40] sm:$0xff]  ;;  %v27_v27 = vld [vmem:[%s1106_s0 + $0x48] sm:$0xff]  ;;  %v86_v28 = vadd.f32 %v43_v25, %v42_v24  ;;  %v44_v30 = vld [vmem:[%s1106_s0 + $0xd0] sm:$0xff] }
   0x8   :  { %78 = vadd.xlane.f32.xlu1 %v77_v10  ;;  %v62_v29 = vadd.f32 %v27_v27, %v26_v26  ;;  %v45_v31 = vld [vmem:[%s1106_s0 + $0xd8] sm:$0xff]  ;;  %v28_v32 = vld [vmem:[%s1106_s0 + $0x50] sm:$0xff]  ;;  %v46_v36 = vld [vmem:[%s1106_s0 + $0xe0] sm:$0xff] }
   0x9   :  { %54 = vadd.xlane.f32.xlu0 %v53_v11  ;;  %v29_v33 = vld [vmem:[%s1106_s0 + $0x58] sm:$0xff]  ;;  %v89_v34 = vadd.f32 %v45_v31, %v44_v30  ;;  %v47_v37 = vld [vmem:[%s1106_s0 + $0xe8] sm:$0xff]  ;;  %v30_v38 = vld [vmem:[%s1106_s0 + $0x60] sm:$0xff] }
   0xa   :  { %v65_v35 = vadd.f32 %v29_v33, %v28_v32  ;;  %v31_v39 = vld [vmem:[%s1106_s0 + $0x68] sm:$0xff]  ;;  %v92_v40 = vadd.f32 %v47_v37, %v46_v36  ;;  %v48_v42 = vld [vmem:[%s1106_s0 + $0xf0] sm:$0xff]  ;;  %v49_v43 = vld [vmem:[%s1106_s0 + $0xf8] sm:$0xff] }
   0xb   :  { %v68_v41 = vadd.f32 %v31_v39, %v30_v38  ;;  %v32_v44 = vld [vmem:[%s1106_s0 + $0x70] sm:$0xff]  ;;  %v33_v45 = vld [vmem:[%s1106_s0 + $0x78] sm:$0xff]  ;;  %v95_v46 = vadd.f32 %v49_v43, %v48_v42  ;;  %v131_v48 = vld [vmem:[%s1107_s1] sm:$0xff] }
   0xc   :  { %81 = vadd.xlane.f32.xlu1 %v80_v16  ;;  %v71_v47 = vadd.f32 %v33_v45, %v32_v44  ;;  %v132_v49 = vld [vmem:[%s1107_s1 + $0x8] sm:$0xff]  ;;  %v722_v50 = vcombine.high %v131_v48, %v131_v48  ;;  %v721_v52 = vcombine.low %v131_v48, %v131_v48  ;;  %v811_v57 = vld [vmem:[%s1108_s2 + $0x40] sm:$0xff]  }
   0xd   :  { %57 = vadd.xlane.f32.xlu0 %v56_v17  ;;  %v724_v51 = vcombine.high %v132_v49, %v132_v49  ;;  %v723_v53 = vcombine.low %v132_v49, %v132_v49  ;;  %v812_v58 = vld [vmem:[%s1108_s2 + $0xc0] sm:$0xff]  }
   0xe   :  { %725 = vmatprep.subr.msk.bf16.mxu0 %vm267_vm0, %v722_v50  ;;  %v269_v54 = vsel %vm267_vm0, %v721_v52, 0 }
   0xf   :  { %727 = vmatprep.subr.msk.bf16.mxu1 %vm267_vm0, %v724_v51  ;;  %v275_v55 = vsel %vm267_vm0, %v723_v53, 0  ;;  %281 = vmatpush1.bf16.msra.mxu0 %v269_v54 }
  0x10   :  { %84 = vadd.xlane.f32.xlu1 %v83_v22  ;;  %324 = vmatpush1.bf16.msra.mxu1 %v275_v55  ;;  %v977_v22 = vsub.s32 %v166_v8, %v168_v9 }
  0x11   :  { %60 = vadd.xlane.f32.xlu0 %v59_v23  ;;  %762 = vmatprep.subr.bf16.mxu0 %v811_v57 }
  0x12   :  { %784 = vmatprep.subr.bf16.mxu1 %v812_v58 }
  0x14   :  { %87 = vadd.xlane.f32.xlu1 %v86_v28 }
  0x15   :  { %63 = vadd.xlane.f32.xlu0 %v62_v29 }
  0x18   :  { %90 = vadd.xlane.f32.xlu1 %v89_v34 }
  0x19   :  { %66 = vadd.xlane.f32.xlu0 %v65_v35 }
  0x1c   :  { %93 = vadd.xlane.f32.xlu1 %v92_v40 }
  0x1d   :  { %69 = vadd.xlane.f32.xlu0 %v68_v41 }
  0x20   :  { %96 = vadd.xlane.f32.xlu1 %v95_v46 }
  0x21   :  { %72 = vadd.xlane.f32.xlu0 %v71_v47 }
  0x91   :  { %v76_v59 = vpop.xlane.xlu1 %75 }
  0x92   :  { %v52_v60 = vpop.xlane.xlu0 %51  ;;  %v107_v4 = vmul.f32 0.00390625, %v76_v59 }
  0x93   :  { %v99_v6 = vmul.f32 0.00390625, %v52_v60 }
  0x94   :  { %v123_v13 = vpack.c.bf16 %v107_v4, %v107_v4 }
  0x95   :  { %v79_v61 = vpop.xlane.xlu1 %78  ;;  %v115_v17 = vpack.c.bf16 %v99_v6, %v99_v6 }
  0x96   :  { %v55_v62 = vpop.xlane.xlu0 %54  ;;  %v108_v2 = vmul.f32 0.00390625, %v79_v61  ;;  %v157_v26 = vunpack.c.l.b16 %v123_v13 }
  0x97   :  { %v100_v7 = vmul.f32 0.00390625, %v55_v62  ;;  %v149_v31 = vunpack.c.l.b16 %v115_v17 }
  0x98   :  { %v124_v10 = vpack.c.bf16 %v108_v2, %v108_v2  ;;  %v202_v42 = vrot.slane %v157_v26, %v977_v22 }
  0x99   :  { %v82_v63 = vpop.xlane.xlu1 %81  ;;  %v116_v20 = vpack.c.bf16 %v100_v7, %v100_v7  ;;  %v170_v47 = vrot.slane %v149_v31, %v977_v22  ;;  %v814_v31 = vld [vmem:[%s1108_s2 + $0x80] sm:$0xff]  }
  0x9a   :  { %v58_v0 = vpop.xlane.xlu0 %57  ;;  %v109_v11 = vmul.f32 0.00390625, %v82_v63  ;;  %v158_v23 = vunpack.c.l.b16 %v124_v10 }
  0x9b   :  { %v101_v14 = vmul.f32 0.00390625, %v58_v0  ;;  %v150_v35 = vunpack.c.l.b16 %v116_v20 }
  0x9c   :  { %v125_v24 = vpack.c.bf16 %v109_v11, %v109_v11  ;;  %v206_v38 = vrot.slane %v158_v23, %v977_v22 }
  0x9d   :  { %v85_v3 = vpop.xlane.xlu1 %84  ;;  %v117_v27 = vpack.c.bf16 %v101_v14, %v101_v14  ;;  %v174_v51 = vrot.slane %v150_v35, %v977_v22  ;;  %v818_v35 = vld [vmem:[%s1108_s2 + $0x88] sm:$0xff]  }
  0x9e   :  { %v61_v5 = vpop.xlane.xlu0 %60  ;;  %v110_v15 = vmul.f32 0.00390625, %v85_v3  ;;  %v159_v39 = vunpack.c.l.b16 %v125_v24  ;;  %v245_v55 = vsel %vm231_vm1, %v206_v38, %v202_v42  ;;  %v821_v38 = vld [vmem:[%s1108_s2 + $0x10] sm:$0xff]   ;;  %v825_v42 = vld [vmem:[%s1108_s2 + $0x18] sm:$0xff]  }
  0x9f   :  { %v102_v18 = vmul.f32 0.00390625, %v61_v5  ;;  %v151_v43 = vunpack.c.l.b16 %v117_v27  ;;  %v232_v5 = vsel %vm231_vm1, %v174_v51, %v170_v47  ;;  %v830_v47 = vld [vmem:[%s1108_s2 + $0xa0] sm:$0xff]   ;;  %v834_v51 = vld [vmem:[%s1108_s2 + $0xa8] sm:$0xff]  }
  0xa0   :  { %v126_v28 = vpack.c.bf16 %v110_v15, %v110_v15  ;;  %v210_v56 = vrot.slane %v159_v39, %v977_v22  ;;  %v822_v39 = vld [vmem:[%s1108_s2 + $0x90] sm:$0xff]  }
  0xa1   :  { %v88_v12 = vpop.xlane.xlu1 %87  ;;  %v118_v32 = vpack.c.bf16 %v102_v18, %v102_v18  ;;  %v178_v60 = vrot.slane %v151_v43, %v977_v22  ;;  %v826_v43 = vld [vmem:[%s1108_s2 + $0x98] sm:$0xff]  }
  0xa2   :  { %v64_v16 = vpop.xlane.xlu0 %63  ;;  %v111_v19 = vmul.f32 0.00390625, %v88_v12  ;;  %v160_v44 = vunpack.c.l.b16 %v126_v28  ;;  %v246_v9 = vsel %vm233_vm2, %v210_v56, %v245_v55  ;;  %v838_v55 = vld [vmem:[%s1108_s2 + $0xb0] sm:$0xff]   ;;  %v839_v56 = vld [vmem:[%s1108_s2 + $0x78] sm:$0xff]  }
  0xa3   :  { %v103_v21 = vmul.f32 0.00390625, %v64_v16  ;;  %v152_v48 = vunpack.c.l.b16 %v118_v32  ;;  %v234_v13 = vsel %vm233_vm2, %v178_v60, %v232_v5 }
  0xa4   :  { %v127_v33 = vpack.c.bf16 %v111_v19, %v111_v19  ;;  %v214_v61 = vrot.slane %v160_v44, %v977_v22  ;;  %v827_v44 = vld [vmem:[%s1108_s2 + $0x60] sm:$0xff]  }
  0xa5   :  { %v91_v25 = vpop.xlane.xlu1 %90  ;;  %v119_v36 = vpack.c.bf16 %v103_v21, %v103_v21  ;;  %v182_v1 = vrot.slane %v152_v48, %v977_v22  ;;  %v831_v48 = vld [vmem:[%s1108_s2 + $0x68] sm:$0xff]  }
  0xa6   :  { %v112_v29 = vmul.f32 0.00390625, %v91_v25  ;;  %v67_v30 = vpop.xlane.xlu0 %66  ;;  %v161_v49 = vunpack.c.l.b16 %v127_v33  ;;  %v247_v14 = vsel %vm235_vm3, %v214_v61, %v246_v9  ;;  %v815_v33 = vld [vmem:[%s1108_s2 + $0x48] sm:$0xff]  }
  0xa7   :  { %v104_v34 = vmul.f32 0.00390625, %v67_v30  ;;  %v153_v52 = vunpack.c.l.b16 %v119_v36  ;;  %v236_v17 = vsel %vm235_vm3, %v182_v1, %v234_v13  ;;  %v813_v30 = vld [vmem:[%s1108_s2] sm:$0xff]   ;;  %v819_v36 = vld [vmem:[%s1108_s2 + $0x50] sm:$0xff]  }
  0xa8   :  { %v128_v37 = vpack.c.bf16 %v112_v29, %v112_v29  ;;  %v218_v2 = vrot.slane %v161_v49, %v977_v22  ;;  %v832_v49 = vld [vmem:[%s1108_s2 + $0xe8] sm:$0xff]  }
  0xa9   :  { %v120_v40 = vpack.c.bf16 %v104_v34, %v104_v34  ;;  %v94_v41 = vpop.xlane.xlu1 %93  ;;  %v186_v6 = vrot.slane %v153_v52, %v977_v22  ;;  %v817_v34 = vld [vmem:[%s1108_s2 + $0x8] sm:$0xff]   ;;  %v835_v52 = vld [vmem:[%s1108_s2 + $0x70] sm:$0xff]  }
  0xaa   :  { %v113_v45 = vmul.f32 0.00390625, %v94_v41  ;;  %v70_v46 = vpop.xlane.xlu0 %69  ;;  %v162_v53 = vunpack.c.l.b16 %v128_v37  ;;  %v248_v18 = vsel %vm237_vm4, %v218_v2, %v247_v14  ;;  %v820_v37 = vld [vmem:[%s1108_s2 + $0xd0] sm:$0xff]   ;;  %v824_v41 = vld [vmem:[%s1108_s2 + $0xd8] sm:$0xff]  }
  0xab   :  { %v105_v50 = vmul.f32 0.00390625, %v70_v46  ;;  %v154_v57 = vunpack.c.l.b16 %v120_v40  ;;  %v238_v20 = vsel %vm237_vm4, %v186_v6, %v236_v17  ;;  %v823_v40 = vld [vmem:[%s1108_s2 + $0x58] sm:$0xff]   ;;  %v829_v46 = vld [vmem:[%s1108_s2 + $0x20] sm:$0xff]  }
  0xac   :  { %v129_v54 = vpack.c.bf16 %v113_v45, %v113_v45  ;;  %v222_v7 = vrot.slane %v162_v53, %v977_v22  ;;  %v828_v45 = vld [vmem:[%s1108_s2 + $0xe0] sm:$0xff]   ;;  %v836_v53 = vld [vmem:[%s1108_s2 + $0xf0] sm:$0xff]  }
  0xad   :  { %v121_v58 = vpack.c.bf16 %v105_v50, %v105_v50  ;;  %v97_v59 = vpop.xlane.xlu1 %96  ;;  %v190_v10 = vrot.slane %v154_v57, %v977_v22  ;;  %v833_v50 = vld [vmem:[%s1108_s2 + $0x28] sm:$0xff]   ;;  %v840_v57 = vld [vmem:[%s1108_s2 + $0xf8] sm:$0xff]  }
  0xae   :  { %v163_v62 = vunpack.c.l.b16 %v129_v54  ;;  %v114_v63 = vmul.f32 0.00390625, %v97_v59  ;;  %v73_v0 = vpop.xlane.xlu0 %72  ;;  %v249_v21 = vsel %vm239_vm5, %v222_v7, %v248_v18  ;;  %v837_v54 = vld [vmem:[%s1108_s2 + $0x30] sm:$0xff]   ;;  %v842_v59 = vld [vmem:[%s1108_s2 + $0xb8] sm:$0xff]  }
  0xaf   :  { %v155_v3 = vunpack.c.l.b16 %v121_v58  ;;  %v106_v4 = vmul.f32 0.00390625, %v73_v0  ;;  %v240_v24 = vsel %vm239_vm5, %v190_v10, %v238_v20  ;;  %v841_v58 = vld [vmem:[%s1108_s2 + $0x38] sm:$0xff]   ;;  %v729_v10 = vld [vmem:[%s1109_s3] ss:$0 sm:$0xff] }
  0xb0   :  { %v130_v8 = vpack.c.bf16 %v114_v63, %v114_v63  ;;  %v226_v11 = vrot.slane %v163_v62, %v977_v22 }
  0xb1   :  { %v122_v12 = vpack.c.bf16 %v106_v4, %v106_v4  ;;  %v194_v15 = vrot.slane %v155_v3, %v977_v22 }
  0xb2   :  { %v164_v16 = vunpack.c.l.b16 %v130_v8  ;;  %v250_v25 = vsel %vm241_vm6, %v226_v11, %v249_v21 }
  0xb3   :  { %v156_v19 = vunpack.c.l.b16 %v122_v12  ;;  %v242_v27 = vsel %vm241_vm6, %v194_v15, %v240_v24 }
  0xb4   :  { %v230_v23 = vrot.slane %v164_v16, %v977_v22 }
  0xb5   :  { %v198_v26 = vrot.slane %v156_v19, %v977_v22  ;;  %v816_v22 = vld [vmem:[%s1108_s2 + $0xc8] sm:$0xff]  }
  0xb6   :  { %v251_v28 = vsel %vm243_vm7, %v230_v23, %v250_v25 }
  0xb7   :  { %v244_v29 = vsel %vm243_vm7, %v198_v26, %v242_v27 }
  0xb8   :  { %v252_v32 = vpack.c.b16 %v251_v28, %v244_v29 }
  0xba   :  { %726 = vmatmul.mubr.msk.bf16.vlgmr.msra.gmra.mrb[0].mxu0 %vm263_vm8, %v252_v32  ;;  %728 = vmatmul.mubr.msk.bf16.vlgmr.msra.gmra.mrb[0].mxu1 %vm263_vm8, %v252_v32 }
  0xbb   :  { %763 = vmatpush3.bf16.msra.mxu0 %v813_v30  ;;  %785 = vmatpush3.bf16.msra.mxu1 %v814_v31 }
  0xbc   :  { %764 = vmatprep.subr.bf16.mxu0 %v815_v33  ;;  %786 = vmatprep.subr.bf16.mxu1 %v816_v22 }
  0xbf   :  { %765 = vmatpush3.bf16.msra.mxu0 %v817_v34  ;;  %787 = vmatpush3.bf16.msra.mxu1 %v818_v35 }
  0xc0   :  { %766 = vmatprep.subr.bf16.mxu0 %v819_v36  ;;  %788 = vmatprep.subr.bf16.mxu1 %v820_v37 }
  0xc3   :  { %767 = vmatpush3.bf16.msra.mxu0 %v821_v38  ;;  %789 = vmatpush3.bf16.msra.mxu1 %v822_v39 }
  0xc4   :  { %768 = vmatprep.subr.bf16.mxu0 %v823_v40  ;;  %790 = vmatprep.subr.bf16.mxu1 %v824_v41 }
  0xc7   :  { %769 = vmatpush3.bf16.msra.mxu0 %v825_v42  ;;  %791 = vmatpush3.bf16.msra.mxu1 %v826_v43 }
  0xc8   :  { %770 = vmatprep.subr.bf16.mxu0 %v827_v44  ;;  %792 = vmatprep.subr.bf16.mxu1 %v828_v45 }
  0xcb   :  { %771 = vmatpush3.bf16.msra.mxu0 %v829_v46  ;;  %793 = vmatpush3.bf16.msra.mxu1 %v830_v47 }
  0xcc   :  { %772 = vmatprep.subr.bf16.mxu0 %v831_v48  ;;  %794 = vmatprep.subr.bf16.mxu1 %v832_v49 }
  0xcf   :  { %773 = vmatpush3.bf16.msra.mxu0 %v833_v50  ;;  %795 = vmatpush3.bf16.msra.mxu1 %v834_v51 }
  0xd0   :  { %774 = vmatprep.subr.bf16.mxu0 %v835_v52  ;;  %796 = vmatprep.subr.bf16.mxu1 %v836_v53 }
  0xd3   :  { %775 = vmatpush3.bf16.msra.mxu0 %v837_v54  ;;  %797 = vmatpush3.bf16.msra.mxu1 %v838_v55 }
  0xd4   :  { %776 = vmatprep.subr.bf16.mxu0 %v839_v56  ;;  %798 = vmatprep.subr.bf16.mxu1 %v840_v57 }
  0xd7   :  { %777 = vmatpush3.bf16.msra.mxu0 %v841_v58  ;;  %799 = vmatpush3.bf16.msra.mxu1 %v842_v59 }
 0x18d   :  { %v314_v60 = vpop.f32.mrb[0].mxu0  ;;  %v357_v61 = vpop.f32.mrb[0].mxu1 }
 0x18e   :  { %v316_v62 = vpop.f32.mrb[1].mxu0  ;;  %v359_v63 = vpop.f32.mrb[1].mxu1 }
 0x18f   :  { %v318_v0 = vpop.f32.mrb[2].mxu0  ;;  %v361_v1 = vpop.f32.mrb[2].mxu1 }
 0x190   :  { %v366_v2 = vpack.c.bf16 %v318_v0, %v314_v60  ;;  %v368_v3 = vpack.c.bf16 %v361_v1, %v357_v61  ;;  %v320_v4 = vpop.f32.mrb[3].mxu0  ;;  %v363_v5 = vpop.f32.mrb[3].mxu1 }
 0x191   :  { %v367_v6 = vpack.c.bf16 %v320_v4, %v316_v62  ;;  %v369_v7 = vpack.c.bf16 %v363_v5, %v359_v63 }
 0x193   :  { %665 = vmatprep.mubr.bf16.mxu0 %v367_v6  ;;  %706 = vmatprep.mubr.bf16.mxu1 %v369_v7 }
 0x194   :  { %666 = vmatmul.mubr.bf16.vlgmr.msra.gmra.mrb[4].mxu0 %v366_v2  ;;  %707 = vmatmul.mubr.bf16.vlgmr.msra.gmra.mrb[4].mxu1 %v368_v3 }
 0x267   :  { %v778_v8 = vpop.f32.mrb[4].mxu0  ;;  %v800_v9 = vpop.f32.mrb[4].mxu1 }
 0x268   :  { %v779_v11 = vpop.f32.mrb[5].mxu0  ;;  %v801_v12 = vpop.f32.mrb[5].mxu1 }
 0x269   :  { %v780_v13 = vadd.f32 %v779_v11, %v778_v8  ;;  %v802_v14 = vadd.f32 %v801_v12, %v800_v9  ;;  %v781_v15 = vpop.f32.mrb[6].mxu0  ;;  %v803_v16 = vpop.f32.mrb[6].mxu1 }
 0x26a   :  { %v782_v17 = vpop.f32.mrb[7].mxu0  ;;  %v804_v18 = vpop.f32.mrb[7].mxu1 }
 0x26b   :  { %v668_v19 = vadd.f32 %v780_v13, %v729_v10  ;;  %v783_v20 = vadd.f32 %v782_v17, %v781_v15  ;;  %v805_v21 = vadd.f32 %v804_v18, %v803_v16 }
 0x26d   :  { %v709_v23 = vadd.f32 %v802_v14, %v668_v19  ;;  %v671_v24 = vadd.f32 %v783_v20, %v729_v10 }
 0x26f   :  { %715 = vst [vmem:[%s1110_s4] sm:$0xff] %v709_v23  ;;  %v712_v25 = vadd.f32 %v805_v21, %v671_v24 }
 0x271   :  { %716 = vst [vmem:[%s1110_s4 + $0x8] sm:$0xff] %v712_v25 }

</bundles_post_ra>
